<compile_context>
chip_gen: v5e
topology: v5e:2x2
jax: 0.10.0
libtpu: 0.0.40
codegen_flags: <defaults>
</compile_context>

<pallas_src>
import jax
import jax.numpy as jnp
from jax import lax
from jax.experimental import pallas as pl
from jax.experimental.pallas import tpu as pltpu

BN_EPS = 1e-5
_FAST_PATH_BYTES = 4 * 1024 * 1024        # fused single-kernel threshold
_TILE_VMEM_BUDGET = 12 * 1024 * 1024      # budget for double-buffered tiles


# ---------------------------------------------------------------------------
# 3x3 'valid' conv via 9 scalar taps.  Both layouts use the *identical*
# accumulation order so the two code paths agree to f32 rounding.
# ---------------------------------------------------------------------------
def _conv3x3_batch_leading(x, ws, bias):
    """x: (nb, Hc, Wc) -> (nb, Hc-2, Wc-2).  Batch leading, W on lanes."""
    nb, Hc, Wc = x.shape
    Ho, Wo = Hc - 2, Wc - 2
    xs = [x[:, :, dx:dx + Wo] for dx in range(3)]        # 3 lane shifts, hoisted
    acc = None
    for dy in range(3):
        for dx in range(3):
            tap = ws[3 * dy + dx] * xs[dx][:, dy:dy + Ho, :]
            acc = tap if acc is None else acc + tap
    return acc + bias


def _conv3x3_batch_on_lanes(x, ws, bias):
    """x: (Hc, Wc, nb) -> (Hc-2, Wc-2, nb).  Batch chunk on the 128-lane axis."""
    Hc, Wc, nb = x.shape
    Ho, Wo = Hc - 2, Wc - 2
    xs = [x[:, dx:dx + Wo, :] for dx in range(3)]        # 3 sublane shifts, hoisted
    acc = None
    for dy in range(3):
        for dx in range(3):
            tap = ws[3 * dy + dx] * xs[dx][dy:dy + Ho, :, :]
            acc = tap if acc is None else acc + tap
    return acc + bias


# ---------------------------------------------------------------------------
# Fast path: everything fused in a single kernel (whole problem in VMEM).
# ---------------------------------------------------------------------------
def _make_fused_kernel(inv_count):
    def kernel(x_ref, w_ref, b_ref, gamma_ref, beta_ref, out_ref):
        x = x_ref[...]                                   # (N, H, W)
        ws = [w_ref[k] for k in range(9)]                # read SMEM weights once
        bias = b_ref[0]
        y = jnp.round(_conv3x3_batch_leading(x, ws, bias))
        y = jnp.tanh(_conv3x3_batch_leading(y, ws, bias))
        s = jnp.sum(y, keepdims=True)                    # (1,1,1)
        q = jnp.sum(y * y, keepdims=True)
        mean = s * inv_count
        var = jnp.maximum(q * inv_count - mean * mean, 0.0)   # biased var
        inv = lax.rsqrt(var + BN_EPS)
        scale = 2.0 * gamma_ref[0] * inv                 # folds BN scale + (y+y)
        shift = 2.0 * beta_ref[0] - scale * mean
        out_ref[...] = y * scale + shift
    return kernel


# ---------------------------------------------------------------------------
# General path, pass 1: conv -> round -> conv -> tanh on lane-batched tiles,
# plus one combined (sum, sumsq) stats block per tile.
# ---------------------------------------------------------------------------
def _fwd_stats_kernel(x_ref, w_ref, b_ref, y_ref, stats_ref):
    x = x_ref[...]                                       # (H, W, nb)
    ws = [w_ref[k] for k in range(9)]
    bias = b_ref[0]
    y = jnp.round(_conv3x3_batch_on_lanes(x, ws, bias))
    y = jnp.tanh(_conv3x3_batch_on_lanes(y, ws, bias))
    y_ref[...] = y                                       # (Ho, Wo, nb), lane-dense
    s = jnp.sum(y, keepdims=True)                        # (1,1,1)
    q = jnp.sum(y * y, keepdims=True)
    lane = lax.broadcasted_iota(jnp.int32, (1, 1, 2), 2)
    stats_ref[...] = jnp.where(lane == 0, s, q)          # single (1,1,2) store


# ---------------------------------------------------------------------------
# General path, pass 2: combine the per-tile stats in-kernel, then apply the
# folded BN + (y+y) affine on a sublane/lane-dense (Ho*Wo, N) view of y.
# ---------------------------------------------------------------------------
def _make_affine_kernel(inv_count):
    def kernel(y_ref, stats_ref, gamma_ref, beta_ref, out_ref):
        st = stats_ref[...]                              # (n_tiles, 1, 2)
        s = jnp.sum(st[:, :, 0:1], axis=0)               # (1, 1)
        q = jnp.sum(st[:, :, 1:2], axis=0)               # (1, 1)
        mean = s * inv_count
        var = jnp.maximum(q * inv_count - mean * mean, 0.0)
        inv = lax.rsqrt(var + BN_EPS)
        scale = 2.0 * gamma_ref[0] * inv
        shift = 2.0 * beta_ref[0] - scale * mean
        out_ref[...] = y_ref[...] * scale + shift        # (Ho*Wo, nb)
    return kernel


def _choose_batch_tile(N, H, W, Ho, Wo):
    """Largest 128-multiple batch chunk whose double-buffered tiles fit budget."""
    per_img = 4 * 2 * (H * W + Ho * Wo)                  # f32, in+out, double-buffered
    cap = max(1, _TILE_VMEM_BUDGET // per_img)
    cands = [d for d in range(128, N + 1, 128) if N % d == 0]
    fitting = [d for d in cands if d <= cap]
    if fitting:
        two_plus = [d for d in fitting if N // d >= 2]   # feed both v7x TensorCores
        return max(two_plus) if two_plus else max(fitting)
    if cands:
        return min(cands)
    # TODO(synk): pad/mask a ragged batch up to a multiple of 128; until then
    # fall back to one whole-batch tile (lane axis == full N).
    return N


def model_forward(x_nchw, conv_w, conv_b, bn_gamma, bn_beta, *,
                  batch_tile=None, use_fast_path=None):
    """x_nchw: (N, 1, H, W). conv_w: (1,1,3,3). Returns (N, 1, H-4, W-4) f32."""
    N, C, H, W = x_nchw.shape
    assert C == 1
    Ho, Wo = H - 4, W - 4
    assert Ho >= 1 and Wo >= 1, "input too small for two valid 3x3 convs"

    x = x_nchw.reshape(N, H, W).astype(jnp.float32)
    w_flat = conv_w.reshape(9).astype(jnp.float32)
    bias = conv_b.reshape(1).astype(jnp.float32)
    gamma = bn_gamma.reshape(1).astype(jnp.float32)
    beta = bn_beta.reshape(1).astype(jnp.float32)
    inv_count = 1.0 / float(N * Ho * Wo)

    # ---- small-problem fast path: single fused kernel, one dispatch --------
    footprint = 4 * N * (H * W + (H - 2) * (W - 2) + Ho * Wo)
    if use_fast_path is None:
        use_fast_path = footprint <= _FAST_PATH_BYTES
    if use_fast_path:
        out = pl.pallas_call(
            _make_fused_kernel(inv_count),
            grid=(1,),
            out_shape=jax.ShapeDtypeStruct((N, Ho, Wo), jnp.float32),
            in_specs=[
                pl.BlockSpec((N, H, W), lambda i: (0, 0, 0)),
                pl.BlockSpec(memory_space=pltpu.MemorySpace.SMEM),   # weights (9,)
                pl.BlockSpec(memory_space=pltpu.MemorySpace.SMEM),   # bias (1,)
                pl.BlockSpec(memory_space=pltpu.MemorySpace.SMEM),   # gamma (1,)
                pl.BlockSpec(memory_space=pltpu.MemorySpace.SMEM),   # beta (1,)
            ],
            out_specs=pl.BlockSpec((N, Ho, Wo), lambda i: (0, 0, 0)),
        )(x, w_flat, bias, gamma, beta)
        return out.reshape(N, 1, Ho, Wo)

    # ---- general two-pass path: batch chunk on the 128-lane axis -----------
    nb = batch_tile if batch_tile is not None else _choose_batch_tile(N, H, W, Ho, Wo)
    assert N % nb == 0, "batch_tile must divide N"
    assert nb % 128 == 0 or nb == N, \
        "batch_tile is the lane axis: must be a multiple of 128 or the full batch"
    n_tiles = N // nb

    tile_bytes = 4 * nb * (H * W + Ho * Wo)
    vmem_limit = int(min(48 * 1024 * 1024,
                         max(32 * 1024 * 1024, 2 * 2 * tile_bytes)))

    x_t = jnp.transpose(x, (1, 2, 0))                    # (H, W, N): batch on lanes

    # Pass 1: conv pipeline + combined per-tile statistics.
    y3, stats = pl.pallas_call(
        _fwd_stats_kernel,
        grid=(n_tiles,),
        out_shape=(
            jax.ShapeDtypeStruct((Ho, Wo, N), jnp.float32),
            jax.ShapeDtypeStruct((n_tiles, 1, 2), jnp.float32),
        ),
        in_specs=[
            pl.BlockSpec((H, W, nb), lambda i: (0, 0, i)),
            pl.BlockSpec(memory_space=pltpu.MemorySpace.SMEM),       # weights (9,)
            pl.BlockSpec(memory_space=pltpu.MemorySpace.SMEM),       # bias (1,)
        ],
        out_specs=(
            pl.BlockSpec((Ho, Wo, nb), lambda i: (0, 0, i)),
            pl.BlockSpec((1, 1, 2), lambda i: (i, 0, 0)),
        ),
        compiler_params=pltpu.CompilerParams(
            dimension_semantics=("parallel",),
            vmem_limit_bytes=vmem_limit),
    )(x_t, w_flat, bias)

    # Pass 2: in-kernel stats combine + folded BN/(y+y) affine; y aliased to out.
    y2 = y3.reshape(Ho * Wo, N)                          # free reshape, dense layout
    out2 = pl.pallas_call(
        _make_affine_kernel(inv_count),
        grid=(n_tiles,),
        out_shape=jax.ShapeDtypeStruct((Ho * Wo, N), jnp.float32),
        in_specs=[
            pl.BlockSpec((Ho * Wo, nb), lambda i: (0, i)),
            pl.BlockSpec((n_tiles, 1, 2), lambda i: (0, 0, 0)),      # tiny, resident
            pl.BlockSpec(memory_space=pltpu.MemorySpace.SMEM),       # gamma (1,)
            pl.BlockSpec(memory_space=pltpu.MemorySpace.SMEM),       # beta (1,)
        ],
        out_specs=pl.BlockSpec((Ho * Wo, nb), lambda i: (0, i)),
        input_output_aliases={0: 0},                     # y is dead after this
        compiler_params=pltpu.CompilerParams(
            dimension_semantics=("parallel",),
            vmem_limit_bytes=vmem_limit),
    )(y2, stats, gamma, beta)

    out = jnp.transpose(out2.reshape(Ho, Wo, N), (2, 0, 1))
    return out.reshape(N, 1, Ho, Wo)


def _reference(x_nchw, conv_w, conv_b, bn_gamma, bn_beta):
    """Pure-JAX reference for correctness checking."""
    dn = lax.conv_dimension_numbers(x_nchw.shape, conv_w.shape,
                                    ("NCHW", "OIHW", "NCHW"))

    def conv(x):
        y = lax.conv_general_dilated(x, conv_w, (1, 1), "VALID",
                                     dimension_numbers=dn,
                                     precision=lax.Precision.HIGHEST)
        return y + conv_b.reshape(1, 1, 1, 1)

    y = jnp.round(conv(x_nchw))
    y = jnp.tanh(conv(y))
    mean = jnp.mean(y)
    var = jnp.mean((y - mean) ** 2)
    y = (y - mean) / jnp.sqrt(var + BN_EPS) * bn_gamma.reshape(1, 1, 1, 1) + \
        bn_beta.reshape(1, 1, 1, 1)
    return y + y


if __name__ == "__main__":
    key = jax.random.PRNGKey(0)
    kx, kw, kb, kx2 = jax.random.split(key, 4)

    # Conv2d(1, 1, 3) default init (fan_in = 9); BatchNorm2d default affine.
    bound = 1.0 / 3.0
    conv_w = jax.random.uniform(kw, (1, 1, 3, 3), jnp.float32, -bound, bound)
    conv_b = jax.random.uniform(kb, (1,), jnp.float32, -bound, bound)
    bn_gamma = jnp.ones((1,), jnp.float32)
    bn_beta = jnp.zeros((1,), jnp.float32)

    # ---- small demo shape (fast path: single fused kernel) ----------------
    # (The module's original 4x4 input would make the second valid 3x3 conv
    #  degenerate, so use 16x16 spatial as before.)
    N, H, W = 2, 16, 16
    x = jax.random.normal(kx, (N, 1, H, W), jnp.float32)
    out = jax.block_until_ready(
        jax.jit(model_forward)(x, conv_w, conv_b, bn_gamma, bn_beta))
    ref = _reference(x, conv_w, conv_b, bn_gamma, bn_beta)
    assert out.shape == (N, 1, H - 4, W - 4)
    assert jnp.allclose(out, ref, atol=1e-5, rtol=1e-5), "fast path mismatch"

    # ---- also exercise the general two-pass lane-batched path --------------
    N2 = 256                                              # 2 tiles of 128 lanes
    x2 = jax.random.normal(kx2, (N2, 1, H, W), jnp.float32)
    fwd_general = jax.jit(lambda *a: model_forward(*a, use_fast_path=False))
    fwd_fused = jax.jit(lambda *a: model_forward(*a, use_fast_path=True))
    out_g = jax.block_until_ready(
        fwd_general(x2, conv_w, conv_b, bn_gamma, bn_beta))
    out_f = jax.block_until_ready(
        fwd_fused(x2, conv_w, conv_b, bn_gamma, bn_beta))
    assert out_g.shape == (N2, 1, H - 4, W - 4)
    # Both paths use identical tap-by-tap f32 arithmetic; allow only isolated
    # differences (round() sits on half-integer boundaries, so a 1-ulp conv
    # difference can flip a handful of pixels).
    frac_paths = jnp.mean((jnp.abs(out_g - out_f) <= 1e-4).astype(jnp.float32))
    assert float(frac_paths) > 0.999, "general path disagrees with fused path"
    ref2 = _reference(x2, conv_w, conv_b, bn_gamma, bn_beta)
    frac_ref = jnp.mean((jnp.abs(out_g - ref2) <= 1e-3).astype(jnp.float32))
    assert float(frac_ref) > 0.99, "general path deviates from reference"

    print("KERNEL_OK")
</pallas_src>

<mosaic_0001>
module attributes {stable_mosaic.version = 11 : i64} {
  func.func @kernel(%arg0: i32, %arg1: memref<2x16x16xf32, #tpu.memory_space<vmem>>, %arg2: memref<9xf32, #tpu.memory_space<smem>>, %arg3: memref<1xf32, #tpu.memory_space<smem>>, %arg4: memref<1xf32, #tpu.memory_space<smem>>, %arg5: memref<1xf32, #tpu.memory_space<smem>>, %arg6: memref<2x12x12xf32, #tpu.memory_space<vmem>>) attributes {dimension_semantics = [#tpu.dimension_semantics<arbitrary>], iteration_bounds = array<i64: 1>, scalar_prefetch = 0 : i64, scratch_operands = 0 : i64, tpu.core_type = #tpu.core_type<tc>, window_params = [{pipeline_mode = #tpu.pipeline_mode<synchronous>, transform_indices = @transform_0, window_bounds = array<i64: 2, 16, 16>}, {transform_indices = @transform_1, window_bounds = array<i64: 9>}, {transform_indices = @transform_2, window_bounds = array<i64: 1>}, {transform_indices = @transform_3, window_bounds = array<i64: 1>}, {transform_indices = @transform_4, window_bounds = array<i64: 1>}, {pipeline_mode = #tpu.pipeline_mode<synchronous>, transform_indices = @transform_5, window_bounds = array<i64: 2, 12, 12>}]} {
    %c0 = arith.constant 0 : index
    %c0_0 = arith.constant 0 : index
    %c0_1 = arith.constant 0 : index
    %0 = vector.load %arg1[%c0, %c0_0, %c0_1] : memref<2x16x16xf32, #tpu.memory_space<vmem>>, vector<2x16x16xf32>
    %c0_2 = arith.constant 0 : index
    %1 = memref.load %arg2[%c0_2] : memref<9xf32, #tpu.memory_space<smem>>
    %c1 = arith.constant 1 : index
    %2 = memref.load %arg2[%c1] : memref<9xf32, #tpu.memory_space<smem>>
    %c2 = arith.constant 2 : index
    %3 = memref.load %arg2[%c2] : memref<9xf32, #tpu.memory_space<smem>>
    %c3 = arith.constant 3 : index
    %4 = memref.load %arg2[%c3] : memref<9xf32, #tpu.memory_space<smem>>
    %c4 = arith.constant 4 : index
    %5 = memref.load %arg2[%c4] : memref<9xf32, #tpu.memory_space<smem>>
    %c5 = arith.constant 5 : index
    %6 = memref.load %arg2[%c5] : memref<9xf32, #tpu.memory_space<smem>>
    %c6 = arith.constant 6 : index
    %7 = memref.load %arg2[%c6] : memref<9xf32, #tpu.memory_space<smem>>
    %c7 = arith.constant 7 : index
    %8 = memref.load %arg2[%c7] : memref<9xf32, #tpu.memory_space<smem>>
    %c8 = arith.constant 8 : index
    %9 = memref.load %arg2[%c8] : memref<9xf32, #tpu.memory_space<smem>>
    %c0_3 = arith.constant 0 : index
    %10 = memref.load %arg3[%c0_3] : memref<1xf32, #tpu.memory_space<smem>>
    %11 = vector.extract_strided_slice %0 {offsets = [0, 0, 0], sizes = [2, 16, 14], strides = [1, 1, 1]} : vector<2x16x16xf32> to vector<2x16x14xf32>
    %12 = vector.extract_strided_slice %0 {offsets = [0, 0, 1], sizes = [2, 16, 14], strides = [1, 1, 1]} : vector<2x16x16xf32> to vector<2x16x14xf32>
    %13 = vector.extract_strided_slice %0 {offsets = [0, 0, 2], sizes = [2, 16, 14], strides = [1, 1, 1]} : vector<2x16x16xf32> to vector<2x16x14xf32>
    %14 = vector.extract_strided_slice %11 {offsets = [0, 0, 0], sizes = [2, 14, 14], strides = [1, 1, 1]} : vector<2x16x14xf32> to vector<2x14x14xf32>
    %15 = vector.broadcast %1 : f32 to vector<2x14x14xf32>
    %16 = arith.mulf %15, %14 : vector<2x14x14xf32>
    %17 = vector.extract_strided_slice %12 {offsets = [0, 0, 0], sizes = [2, 14, 14], strides = [1, 1, 1]} : vector<2x16x14xf32> to vector<2x14x14xf32>
    %18 = vector.broadcast %2 : f32 to vector<2x14x14xf32>
    %19 = arith.mulf %18, %17 : vector<2x14x14xf32>
    %20 = arith.addf %16, %19 : vector<2x14x14xf32>
    %21 = vector.extract_strided_slice %13 {offsets = [0, 0, 0], sizes = [2, 14, 14], strides = [1, 1, 1]} : vector<2x16x14xf32> to vector<2x14x14xf32>
    %22 = vector.broadcast %3 : f32 to vector<2x14x14xf32>
    %23 = arith.mulf %22, %21 : vector<2x14x14xf32>
    %24 = arith.addf %20, %23 : vector<2x14x14xf32>
    %25 = vector.extract_strided_slice %11 {offsets = [0, 1, 0], sizes = [2, 14, 14], strides = [1, 1, 1]} : vector<2x16x14xf32> to vector<2x14x14xf32>
    %26 = vector.broadcast %4 : f32 to vector<2x14x14xf32>
    %27 = arith.mulf %26, %25 : vector<2x14x14xf32>
    %28 = arith.addf %24, %27 : vector<2x14x14xf32>
    %29 = vector.extract_strided_slice %12 {offsets = [0, 1, 0], sizes = [2, 14, 14], strides = [1, 1, 1]} : vector<2x16x14xf32> to vector<2x14x14xf32>
    %30 = vector.broadcast %5 : f32 to vector<2x14x14xf32>
    %31 = arith.mulf %30, %29 : vector<2x14x14xf32>
    %32 = arith.addf %28, %31 : vector<2x14x14xf32>
    %33 = vector.extract_strided_slice %13 {offsets = [0, 1, 0], sizes = [2, 14, 14], strides = [1, 1, 1]} : vector<2x16x14xf32> to vector<2x14x14xf32>
    %34 = vector.broadcast %6 : f32 to vector<2x14x14xf32>
    %35 = arith.mulf %34, %33 : vector<2x14x14xf32>
    %36 = arith.addf %32, %35 : vector<2x14x14xf32>
    %37 = vector.extract_strided_slice %11 {offsets = [0, 2, 0], sizes = [2, 14, 14], strides = [1, 1, 1]} : vector<2x16x14xf32> to vector<2x14x14xf32>
    %38 = vector.broadcast %7 : f32 to vector<2x14x14xf32>
    %39 = arith.mulf %38, %37 : vector<2x14x14xf32>
    %40 = arith.addf %36, %39 : vector<2x14x14xf32>
    %41 = vector.extract_strided_slice %12 {offsets = [0, 2, 0], sizes = [2, 14, 14], strides = [1, 1, 1]} : vector<2x16x14xf32> to vector<2x14x14xf32>
    %42 = vector.broadcast %8 : f32 to vector<2x14x14xf32>
    %43 = arith.mulf %42, %41 : vector<2x14x14xf32>
    %44 = arith.addf %40, %43 : vector<2x14x14xf32>
    %45 = vector.extract_strided_slice %13 {offsets = [0, 2, 0], sizes = [2, 14, 14], strides = [1, 1, 1]} : vector<2x16x14xf32> to vector<2x14x14xf32>
    %46 = vector.broadcast %9 : f32 to vector<2x14x14xf32>
    %47 = arith.mulf %46, %45 : vector<2x14x14xf32>
    %48 = arith.addf %44, %47 : vector<2x14x14xf32>
    %49 = vector.broadcast %10 : f32 to vector<2x14x14xf32>
    %50 = arith.addf %48, %49 : vector<2x14x14xf32>
    %51 = math.roundeven %50 : vector<2x14x14xf32>
    %52 = vector.extract_strided_slice %51 {offsets = [0, 0, 0], sizes = [2, 14, 12], strides = [1, 1, 1]} : vector<2x14x14xf32> to vector<2x14x12xf32>
    %53 = vector.extract_strided_slice %51 {offsets = [0, 0, 1], sizes = [2, 14, 12], strides = [1, 1, 1]} : vector<2x14x14xf32> to vector<2x14x12xf32>
    %54 = vector.extract_strided_slice %51 {offsets = [0, 0, 2], sizes = [2, 14, 12], strides = [1, 1, 1]} : vector<2x14x14xf32> to vector<2x14x12xf32>
    %55 = vector.extract_strided_slice %52 {offsets = [0, 0, 0], sizes = [2, 12, 12], strides = [1, 1, 1]} : vector<2x14x12xf32> to vector<2x12x12xf32>
    %56 = vector.broadcast %1 : f32 to vector<2x12x12xf32>
    %57 = arith.mulf %56, %55 : vector<2x12x12xf32>
    %58 = vector.extract_strided_slice %53 {offsets = [0, 0, 0], sizes = [2, 12, 12], strides = [1, 1, 1]} : vector<2x14x12xf32> to vector<2x12x12xf32>
    %59 = vector.broadcast %2 : f32 to vector<2x12x12xf32>
    %60 = arith.mulf %59, %58 : vector<2x12x12xf32>
    %61 = arith.addf %57, %60 : vector<2x12x12xf32>
    %62 = vector.extract_strided_slice %54 {offsets = [0, 0, 0], sizes = [2, 12, 12], strides = [1, 1, 1]} : vector<2x14x12xf32> to vector<2x12x12xf32>
    %63 = vector.broadcast %3 : f32 to vector<2x12x12xf32>
    %64 = arith.mulf %63, %62 : vector<2x12x12xf32>
    %65 = arith.addf %61, %64 : vector<2x12x12xf32>
    %66 = vector.extract_strided_slice %52 {offsets = [0, 1, 0], sizes = [2, 12, 12], strides = [1, 1, 1]} : vector<2x14x12xf32> to vector<2x12x12xf32>
    %67 = vector.broadcast %4 : f32 to vector<2x12x12xf32>
    %68 = arith.mulf %67, %66 : vector<2x12x12xf32>
    %69 = arith.addf %65, %68 : vector<2x12x12xf32>
    %70 = vector.extract_strided_slice %53 {offsets = [0, 1, 0], sizes = [2, 12, 12], strides = [1, 1, 1]} : vector<2x14x12xf32> to vector<2x12x12xf32>
    %71 = vector.broadcast %5 : f32 to vector<2x12x12xf32>
    %72 = arith.mulf %71, %70 : vector<2x12x12xf32>
    %73 = arith.addf %69, %72 : vector<2x12x12xf32>
    %74 = vector.extract_strided_slice %54 {offsets = [0, 1, 0], sizes = [2, 12, 12], strides = [1, 1, 1]} : vector<2x14x12xf32> to vector<2x12x12xf32>
    %75 = vector.broadcast %6 : f32 to vector<2x12x12xf32>
    %76 = arith.mulf %75, %74 : vector<2x12x12xf32>
    %77 = arith.addf %73, %76 : vector<2x12x12xf32>
    %78 = vector.extract_strided_slice %52 {offsets = [0, 2, 0], sizes = [2, 12, 12], strides = [1, 1, 1]} : vector<2x14x12xf32> to vector<2x12x12xf32>
    %79 = vector.broadcast %7 : f32 to vector<2x12x12xf32>
    %80 = arith.mulf %79, %78 : vector<2x12x12xf32>
    %81 = arith.addf %77, %80 : vector<2x12x12xf32>
    %82 = vector.extract_strided_slice %53 {offsets = [0, 2, 0], sizes = [2, 12, 12], strides = [1, 1, 1]} : vector<2x14x12xf32> to vector<2x12x12xf32>
    %83 = vector.broadcast %8 : f32 to vector<2x12x12xf32>
    %84 = arith.mulf %83, %82 : vector<2x12x12xf32>
    %85 = arith.addf %81, %84 : vector<2x12x12xf32>
    %86 = vector.extract_strided_slice %54 {offsets = [0, 2, 0], sizes = [2, 12, 12], strides = [1, 1, 1]} : vector<2x14x12xf32> to vector<2x12x12xf32>
    %87 = vector.broadcast %9 : f32 to vector<2x12x12xf32>
    %88 = arith.mulf %87, %86 : vector<2x12x12xf32>
    %89 = arith.addf %85, %88 : vector<2x12x12xf32>
    %90 = vector.broadcast %10 : f32 to vector<2x12x12xf32>
    %91 = arith.addf %89, %90 : vector<2x12x12xf32>
    %92 = math.tanh %91 : vector<2x12x12xf32>
    %93 = vector.shape_cast %92 : vector<2x12x12xf32> to vector<1x2x12x12xf32>
    %cst = arith.constant dense<0.000000e+00> : vector<1xf32>
    %94 = vector.multi_reduction <add>, %93, %cst [1, 2, 3] : vector<1x2x12x12xf32> to vector<1xf32>
    %95 = vector.shape_cast %94 : vector<1xf32> to vector<1x1x1x1xf32>
    %96 = vector.extract %95[0, 0, 0, 0] : f32 from vector<1x1x1x1xf32>
    %97 = vector.broadcast %96 : f32 to vector<1x1x1xf32>
    %98 = arith.mulf %92, %92 : vector<2x12x12xf32>
    %99 = vector.shape_cast %98 : vector<2x12x12xf32> to vector<1x2x12x12xf32>
    %cst_4 = arith.constant dense<0.000000e+00> : vector<1xf32>
    %100 = vector.multi_reduction <add>, %99, %cst_4 [1, 2, 3] : vector<1x2x12x12xf32> to vector<1xf32>
    %101 = vector.shape_cast %100 : vector<1xf32> to vector<1x1x1x1xf32>
    %102 = vector.extract %101[0, 0, 0, 0] : f32 from vector<1x1x1x1xf32>
    %103 = vector.broadcast %102 : f32 to vector<1x1x1xf32>
    %cst_5 = arith.constant 0.00347222225 : f32
    %104 = vector.broadcast %cst_5 : f32 to vector<1x1x1xf32>
    %105 = arith.mulf %97, %104 : vector<1x1x1xf32>
    %cst_6 = arith.constant 0.00347222225 : f32
    %106 = vector.broadcast %cst_6 : f32 to vector<1x1x1xf32>
    %107 = arith.mulf %103, %106 : vector<1x1x1xf32>
    %108 = arith.mulf %105, %105 : vector<1x1x1xf32>
    %109 = arith.subf %107, %108 : vector<1x1x1xf32>
    %cst_7 = arith.constant 0.000000e+00 : f32
    %110 = vector.broadcast %cst_7 : f32 to vector<1x1x1xf32>
    %111 = arith.maximumf %109, %110 : vector<1x1x1xf32>
    %cst_8 = arith.constant 9.99999974E-6 : f32
    %112 = vector.broadcast %cst_8 : f32 to vector<1x1x1xf32>
    %113 = arith.addf %111, %112 : vector<1x1x1xf32>
    %114 = math.rsqrt %113 : vector<1x1x1xf32>
    %c0_9 = arith.constant 0 : index
    %115 = memref.load %arg4[%c0_9] : memref<1xf32, #tpu.memory_space<smem>>
    %cst_10 = arith.constant 2.000000e+00 : f32
    %116 = arith.mulf %cst_10, %115 : f32
    %117 = vector.broadcast %116 : f32 to vector<1x1x1xf32>
    %118 = arith.mulf %117, %114 : vector<1x1x1xf32>
    %c0_11 = arith.constant 0 : index
    %119 = memref.load %arg5[%c0_11] : memref<1xf32, #tpu.memory_space<smem>>
    %cst_12 = arith.constant 2.000000e+00 : f32
    %120 = arith.mulf %cst_12, %119 : f32
    %121 = arith.mulf %118, %105 : vector<1x1x1xf32>
    %122 = vector.broadcast %120 : f32 to vector<1x1x1xf32>
    %123 = arith.subf %122, %121 : vector<1x1x1xf32>
    %124 = vector.broadcast %118 : vector<1x1x1xf32> to vector<2x12x12xf32>
    %125 = arith.mulf %92, %124 : vector<2x12x12xf32>
    %126 = vector.broadcast %123 : vector<1x1x1xf32> to vector<2x12x12xf32>
    %127 = arith.addf %125, %126 : vector<2x12x12xf32>
    %c0_13 = arith.constant 0 : index
    %c0_14 = arith.constant 0 : index
    %c0_15 = arith.constant 0 : index
    %128 = vector.load %arg6[%c0_13, %c0_14, %c0_15] : memref<2x12x12xf32, #tpu.memory_space<vmem>>, vector<2x12x12xf32>
    tpu.vector_store %arg6[%c0_13, %c0_14, %c0_15], %127 {strides = array<i32>} : memref<2x12x12xf32, #tpu.memory_space<vmem>>, vector<2x12x12xf32>,
    return
  }
  func.func @transform_0(%arg0: i32) -> (i32, i32, i32) {
    %c0_i32 = arith.constant 0 : i32
    %c0_i32_0 = arith.constant 0 : i32
    %c0_i32_1 = arith.constant 0 : i32
    %c0_i32_2 = arith.constant 0 : i32
    return %c0_i32, %c0_i32_0, %c0_i32_1 : i32, i32, i32
  }
  func.func @transform_1(%arg0: i32) -> i32 {
    %c0_i32 = arith.constant 0 : i32
    %c0_i32_0 = arith.constant 0 : i32
    return %c0_i32 : i32
  }
  func.func @transform_2(%arg0: i32) -> i32 {
    %c0_i32 = arith.constant 0 : i32
    %c0_i32_0 = arith.constant 0 : i32
    return %c0_i32 : i32
  }
  func.func @transform_3(%arg0: i32) -> i32 {
    %c0_i32 = arith.constant 0 : i32
    %c0_i32_0 = arith.constant 0 : i32
    return %c0_i32 : i32
  }
  func.func @transform_4(%arg0: i32) -> i32 {
    %c0_i32 = arith.constant 0 : i32
    %c0_i32_0 = arith.constant 0 : i32
    return %c0_i32 : i32
  }
  func.func @transform_5(%arg0: i32) -> (i32, i32, i32) {
    %c0_i32 = arith.constant 0 : i32
    %c0_i32_0 = arith.constant 0 : i32
    %c0_i32_1 = arith.constant 0 : i32
    %c0_i32_2 = arith.constant 0 : i32
    return %c0_i32, %c0_i32_0, %c0_i32_1 : i32, i32, i32
  }
}

</mosaic_0001>

<bundles_post_ra>
// kernel: model_forward.1
= control target key start
LH: loop header
LB: loop body
LE: loop exit
PB: predicated region body
PF: predicated region fallthrough
CT: control target
= control target key end

     0   :  { %13 = vsyncpa [#allocation6], 0  ;;  %s1105_s0 = inlined_call_operand.hbm [shape: f32[2,16,16], index: 0, kind: input, shape index: {}]   ;;  %s1106_s1 = inlined_call_operand.vmem [shape: f32[9], index: 1, kind: input, shape index: {}]   ;;  %s1107_s2 = inlined_call_operand.<no memory space> [shape: f32[1], index: 2, kind: input, shape index: {}]   ;;  %s1108_s3 = inlined_call_operand.<no memory space> [shape: f32[1], index: 3, kind: input, shape index: {}]   ;;  %s1109_s4 = inlined_call_operand.<no memory space> [shape: f32[1], index: 4, kind: input, shape index: {}]   ;;  %s1110_s5 = inlined_call_operand.vmem [shape: f32[2,12,12], index: 5, kind: output, shape index: {}]  }
   0x1   :  { %s19_s20 = sshll.u32 %s1105_s0, 4  ;;  %s20_s20 = int_to_ptr.hbm [resolvable:$true] %s19_s20 }
   0x2   :  { %14 = vsyncpa [#allocation7], 0  ;;  %s709_s21 = smov [#allocation5]   ;;  %s33_s25 = sshll.u32 %s1106_s1, 4  ;;  %s34_s25 = int_to_ptr.vmem [resolvable:$true] %s33_s25 }
   0x3   :  { %s21_s22 = sshll.u32 %s709_s21, 4  ;;  %s710_s26 = smov 128   ;;  %s22_s22 = int_to_ptr.vmem [resolvable:$true] %s21_s22 }
   0x4   :  { %s711_s27 = smov 8   ;;  %s712_s28 = smov [#allocation8]  }
   0x5   :  { %27 = dma.hbm_to_vmem [thread:$0]  %s20_s20, 512, %s22_s22, [#allocation6], %s710_s26, %s710_s26, %s711_s27  }
   0x6   :  { %36 = dma.vmem_to_smem %s34_s25, 16, %s712_s28, [#allocation7]  }
   0x7   :  { %705 = dma.done.wait [#allocation6], 512  }
   0x8   :  { %706 = vsyncadd [#allocation6], 4294966784 }
   0x9   :  { %707 = dma.done.wait [#allocation7], 16  }
   0xa   :  { %708 = vsyncadd [#allocation7], 4294967280 }
   0xb   :  { %51 = sfence }
   0xc   :  { %s609_s0 = sld [smem:[#allocation8 + $0x1]]  ;;  %v751_v0 = vld [vmem:[#allocation5 + $0x10] sm:$0xff]  ;;  %v753_v1 = vld [vmem:[#allocation5] sm:$0xff]  ;;  %v763_v6 = vld [vmem:[#allocation5 + $0x8] sm:$0xff]  ;;  %s713_s30 = smov 127   ;;  %vm130_vm0 = vcmask 1046528  }
   0xd   :  { %s610_s29 = sld [smem:[#allocation8 + $0x2]]  ;;  %s714_s6 = smov 126   ;;  %v774_v10 = vld [vmem:[#allocation5 + $0x18] sm:$0xff]  ;;  %vm216_vm1 = vcmask 1045504   ;;  %vm526_vm6 = vcmask 97280   ;;  %vm528_vm7 = vcmask 93184  }
   0xe   :  { %s612_s1 = sld [smem:[#allocation8 + $0x4]]  ;;  %s583_s18 = smul.f32 2.0, %s1108_s3 }
   0xf   :  { %s613_s7 = sld [smem:[#allocation8 + $0x5]]  ;;  %s587_s21 = smul.f32 2.0, %s1109_s4 }
  0x10   :  { %s615_s8 = sld [smem:[#allocation8 + $0x7]] }
  0x11   :  { %s616_s9 = sld [smem:[#allocation8 + $0x8]] }
  0x12   :  { %v755_v2 = vstv %s609_s0  ;;  %s56_s10 = sld [smem:[#allocation8]] }
  0x13   :  { %v74_v3 = vmul.f32 %v755_v2, %v751_v0  ;;  %v72_v4 = vmul.f32 %v755_v2, %v753_v1  ;;  %v761_v5 = vstv %s610_s29  ;;  %v73_v9 = vmul.f32 %v755_v2, %v763_v6  ;;  %s611_s11 = sld [smem:[#allocation8 + $0x3]] }
  0x14   :  { %v98_v7 = vmul.f32 %v761_v5, %v763_v6  ;;  %v97_v8 = vmul.f32 %v761_v5, %v753_v1  ;;  %v75_v11 = vmul.f32 %v755_v2, %v774_v10  ;;  %v778_v12 = vstv %s612_s1  ;;  %s614_s12 = sld [smem:[#allocation8 + $0x6]] }
  0x15   :  { %84 = vrot.lane.b32.xlu1 %v74_v3, %s713_s30  ;;  %80 = vrot.lane.b32.xlu0 %v72_v4, %s713_s30  ;;  %v146_v13 = vmul.f32 %v778_v12, %v753_v1  ;;  %v147_v14 = vmul.f32 %v778_v12, %v763_v6  ;;  %v100_v16 = vmul.f32 %v761_v5, %v774_v10  ;;  %v795_v21 = vstv %s613_s7 }
  0x16   :  { %107 = vrot.lane.b32.xlu2 %v98_v7, %s714_s6  ;;  %v99_v17 = vmul.f32 %v761_v5, %v751_v0  ;;  %v148_v19 = vmul.f32 %v778_v12, %v751_v0  ;;  %v149_v20 = vmul.f32 %v778_v12, %v774_v10  ;;  %v177_v23 = vmul.f32 %v795_v21, %v753_v1 }
  0x17   :  { %v154_v15 = vrot.slane %v146_v13, 1  ;;  %v155_v18 = vrot.slane %v147_v14, 1  ;;  %v178_v24 = vmul.f32 %v795_v21, %v763_v6  ;;  %v179_v31 = vmul.f32 %v795_v21, %v751_v0 }
  0x18   :  { %v157_v25 = vrot.slane %v148_v19, 1  ;;  %v158_v26 = vrot.slane %v149_v20, 1  ;;  %v185_v27 = vrot.slane %v177_v23, 1  ;;  %v180_v32 = vmul.f32 %v795_v21, %v774_v10 }
  0x19   :  { %v156_v22 = vsel %vm130_vm0, %v154_v15, %v155_v18  ;;  %v186_v28 = vrot.slane %v178_v24, 1  ;;  %v814_v33 = vstv %s615_s8  ;;  %v188_v34 = vrot.slane %v179_v31, 1 }
  0x1a   :  { %v159_v29 = vsel %vm130_vm0, %v157_v25, %v158_v26  ;;  %v232_v35 = vmul.f32 %v814_v33, %v753_v1  ;;  %v233_v36 = vmul.f32 %v814_v33, %v763_v6  ;;  %v189_v37 = vrot.slane %v180_v32, 1 }
  0x1b   :  { %v187_v30 = vsel %vm130_vm0, %v185_v27, %v186_v28  ;;  %v824_v41 = vstv %s616_s9  ;;  %v234_v45 = vmul.f32 %v814_v33, %v751_v0  ;;  %v235_v46 = vmul.f32 %v814_v33, %v774_v10 }
  0x1c   :  { %v190_v38 = vsel %vm130_vm0, %v188_v34, %v189_v37  ;;  %v240_v39 = vrot.slane %v232_v35, 2  ;;  %v241_v40 = vrot.slane %v233_v36, 2  ;;  %v263_v43 = vmul.f32 %v824_v41, %v753_v1 }
  0x1d   :  { %105 = vrot.lane.b32.xlu1 %v97_v8, %s714_s6  ;;  %82 = vrot.lane.b32.xlu0 %v73_v9, %s713_s30  ;;  %v264_v44 = vmul.f32 %v824_v41, %v763_v6  ;;  %v243_v49 = vrot.slane %v234_v45, 2  ;;  %v244_v50 = vrot.slane %v235_v46, 2  ;;  %v265_v53 = vmul.f32 %v824_v41, %v751_v0 }
  0x1e   :  { %86 = vrot.lane.b32.xlu2 %v75_v11, %s713_s30  ;;  %v242_v42 = vsel %vm216_vm1, %v240_v39, %v241_v40  ;;  %v271_v47 = vrot.slane %v263_v43, 2  ;;  %v266_v54 = vmul.f32 %v824_v41, %v774_v10  ;;  %v853_v8 = vstv %s56_s10 }
  0x1f   :  { %v272_v48 = vrot.slane %v264_v44, 2  ;;  %v245_v52 = vsel %vm216_vm1, %v243_v49, %v244_v50  ;;  %v274_v55 = vrot.slane %v265_v53, 2  ;;  %v68_v13 = vmul.f32 %v853_v8, %v763_v6 }
  0x20   :  { %v275_v56 = vrot.slane %v266_v54, 2  ;;  %v857_v14 = vstv %s611_s11  ;;  %v67_v15 = vmul.f32 %v853_v8, %v753_v1  ;;  %v865_v27 = vstv %s614_s12 }
  0x21   :  { %v273_v51 = vsel %vm216_vm1, %v271_v47, %v272_v48  ;;  %v124_v34 = vmul.f32 %v857_v14, %v751_v0  ;;  %v125_v35 = vmul.f32 %v857_v14, %v774_v10  ;;  %v70_v47 = vmul.f32 %v853_v8, %v774_v10 }
  0x22   :  { %v276_v57 = vsel %vm216_vm1, %v274_v55, %v275_v56 }
  0x23   :  { %v134_v44 = vrot.slane %v124_v34, 1  ;;  %v135_v45 = vrot.slane %v125_v35, 1 }
  0x25   :  { %111 = vrot.lane.b32.xlu1 %v100_v16, %s714_s6  ;;  %109 = vrot.lane.b32.xlu0 %v99_v17, %s714_s6  ;;  %v122_v17 = vmul.f32 %v857_v14, %v753_v1 }
  0x26   :  { %160 = vrot.lane.b32.xlu2 %v156_v22, %s713_s30 }
  0x27   :  { %v131_v24 = vrot.slane %v122_v17, 1 }
  0x2d   :  { %164 = vrot.lane.b32.xlu1 %v159_v29, %s713_s30  ;;  %162 = vrot.lane.b32.xlu0 %v155_v18, %s713_s30  ;;  %v123_v18 = vmul.f32 %v857_v14, %v763_v6 }
  0x2e   :  { %191 = vrot.lane.b32.xlu2 %v187_v30, %s714_s6  ;;  %v209_v30 = vmul.f32 %v865_v27, %v763_v6  ;;  %v208_v6 = vmul.f32 %v865_v27, %v753_v1  ;;  %v136_v1 = vsel %vm130_vm0, %v134_v44, %v135_v45 }
  0x2f   :  { %v132_v25 = vrot.slane %v123_v18, 1 }
  0x31   :  { %v133_v31 = vsel %vm130_vm0, %v131_v24, %v132_v25 }
  0x35   :  { %166 = vrot.lane.b32.xlu1 %v158_v26, %s713_s30  ;;  %193 = vrot.lane.b32.xlu0 %v186_v28, %s714_s6 }
  0x36   :  { %195 = vrot.lane.b32.xlu2 %v190_v38, %s714_s6  ;;  %v69_v38 = vmul.f32 %v853_v8, %v751_v0 }
  0x3d   :  { %246 = vrot.lane.b32.xlu1 %v242_v42, %s713_s30  ;;  %197 = vrot.lane.b32.xlu0 %v189_v37, %s714_s6 }
  0x3e   :  { %248 = vrot.lane.b32.xlu2 %v241_v40, %s713_s30  ;;  %v218_v40 = vrot.slane %v209_v30, 2 }
  0x45   :  { %277 = vrot.lane.b32.xlu1 %v273_v51, %s714_s6  ;;  %250 = vrot.lane.b32.xlu0 %v245_v52, %s713_s30  ;;  %v883_v51 = vstv %s1107_s2  ;;  %v217_v52 = vrot.slane %v208_v6, 2 }
  0x46   :  { %279 = vrot.lane.b32.xlu2 %v272_v48, %s714_s6 }
  0x4d   :  { %281 = vrot.lane.b32.xlu1 %v276_v57, %s714_s6  ;;  %252 = vrot.lane.b32.xlu0 %v244_v50, %s713_s30 }
  0x4e   :  { %283 = vrot.lane.b32.xlu2 %v275_v56, %s714_s6 }
  0x70   :  { %v108_v58 = vpop.permute.xlu2 %107 }
  0x78   :  { %v87_v59 = vpop.permute.xlu2 %86 }
  0x79   :  { %v95_v57 = vadd.f32 %v87_v59, %v70_v47 }
  0x80   :  { %v161_v60 = vpop.permute.xlu2 %160 }
  0x87   :  { %v85_v61 = vpop.permute.xlu1 %84  ;;  %v81_v62 = vpop.permute.xlu0 %80 }
  0x88   :  { %v192_v63 = vpop.permute.xlu2 %191  ;;  %v92_v22 = vadd.f32 %v81_v62, %v67_v15  ;;  %v94_v48 = vadd.f32 %v85_v61, %v69_v38  ;;  %v219_v61 = vsel %vm216_vm1, %v217_v52, %v218_v40 }
  0x8f   :  { %v106_v3 = vpop.permute.xlu1 %105  ;;  %v83_v4 = vpop.permute.xlu0 %82 }
  0x90   :  { %v851_v7 = vpop.permute.xlu2 %195  ;;  %v93_v16 = vadd.f32 %v83_v4, %v68_v13  ;;  %v117_v28 = vadd.f32 %v106_v3, %v92_v22  ;;  %v211_v3 = vmul.f32 %v865_v27, %v774_v10 }
  0x92   :  { %v118_v23 = vadd.f32 %v108_v58, %v93_v16  ;;  %v141_v39 = vadd.f32 %v133_v31, %v117_v28  ;;  %v221_v59 = vrot.slane %v211_v3, 2 }
  0x94   :  { %v142_v29 = vadd.f32 %v132_v25, %v118_v23  ;;  %v172_v49 = vadd.f32 %v161_v60, %v141_v39  ;;  %v210_v60 = vmul.f32 %v865_v27, %v751_v0 }
  0x96   :  { %v203_v58 = vadd.f32 %v192_v63, %v172_v49 }
  0x97   :  { %v112_v9 = vpop.permute.xlu1 %111  ;;  %v110_v11 = vpop.permute.xlu0 %109 }
  0x98   :  { %v249_v26 = vpop.permute.xlu2 %248  ;;  %v119_v53 = vadd.f32 %v110_v11, %v94_v48  ;;  %v120_v4 = vadd.f32 %v112_v9, %v95_v57  ;;  %v227_v17 = vadd.f32 %v219_v61, %v203_v58 }
  0x9a   :  { %v143_v13 = vadd.f32 %v136_v1, %v119_v53  ;;  %v144_v63 = vadd.f32 %v135_v45, %v120_v4 }
  0x9f   :  { %v165_v19 = vpop.permute.xlu1 %164  ;;  %v163_v20 = vpop.permute.xlu0 %162 }
  0xa0   :  { %v173_v32 = vadd.f32 %v163_v20, %v142_v29  ;;  %v280_v46 = vpop.permute.xlu2 %279  ;;  %v174_v15 = vadd.f32 %v165_v19, %v143_v13  ;;  %v220_v20 = vrot.slane %v210_v60, 2 }
  0xa2   :  { %v205_v0 = vadd.f32 %v851_v7, %v174_v15  ;;  %v222_v9 = vsel %vm216_vm1, %v220_v20, %v221_v59 }
  0xa4   :  { %v229_v35 = vadd.f32 %v222_v9, %v205_v0 }
  0xa7   :  { %v167_v36 = vpop.permute.xlu1 %166  ;;  %v194_v37 = vpop.permute.xlu0 %193 }
  0xa8   :  { %v204_v42 = vadd.f32 %v194_v37, %v173_v32  ;;  %v175_v28 = vadd.f32 %v167_v36, %v144_v63  ;;  %v284_v38 = vpop.permute.xlu2 %283 }
  0xaa   :  { %v228_v43 = vadd.f32 %v218_v40, %v204_v42 }
  0xac   :  { %v259_v50 = vadd.f32 %v249_v26, %v228_v43 }
  0xae   :  { %v290_v54 = vadd.f32 %v280_v46, %v259_v50 }
  0xaf   :  { %v247_v55 = vpop.permute.xlu1 %246  ;;  %v198_v56 = vpop.permute.xlu0 %197 }
  0xb0   :  { %v295_v62 = vadd.f32 %v883_v51, %v290_v54  ;;  %v258_v24 = vadd.f32 %v247_v55, %v227_v17  ;;  %v206_v30 = vadd.f32 %v198_v56, %v175_v28 }
  0xb2   :  { %v627_v11 = vcvt.f32.s32 %v295_v62  ;;  %v625_v18 = vand.u32 2147483647, %v295_v62  ;;  %v630_v23 = vand.u32 2147483648, %v295_v62  ;;  %v230_v36 = vadd.f32 %v221_v59, %v206_v30 }
  0xb4   :  { %v628_v16 = vcvt.s32.f32 %v627_v11  ;;  %vm626_vm2 = vcmp.lt.f32.partialorder %v625_v18, 8388608.0 }
  0xb6   :  { %v629_v22 = vand.u32 2147483647, %v628_v16 }
  0xb7   :  { %v278_v25 = vpop.permute.xlu1 %277  ;;  %v251_v26 = vpop.permute.xlu0 %250 }
  0xb8   :  { %v631_v29 = vor.u32 %v630_v23, %v629_v22  ;;  %v289_v10 = vadd.f32 %v278_v25, %v258_v24  ;;  %v260_v7 = vadd.f32 %v251_v26, %v229_v35 }
  0xba   :  { %v894_v19 = vsel %vm626_vm2, %v631_v29, %v295_v62  ;;  %v294_v31 = vadd.f32 %v883_v51, %v289_v10 }
  0xbb   :  { %v307_v32 = vmul.f32 %v894_v19, %v755_v2  ;;  %v331_v49 = vmul.f32 %v894_v19, %v761_v5  ;;  %v920_v18 = vmul.f32 %v894_v19, %v857_v14  ;;  %v930_v22 = vmul.f32 %v894_v19, %v865_v27 }
  0xbc   :  { %v619_v34 = vcvt.f32.s32 %v294_v31  ;;  %v617_v39 = vand.u32 2147483647, %v294_v31  ;;  %v622_v43 = vand.u32 2147483648, %v294_v31 }
  0xbd   :  { %316 = vrot.lane.b32.xlu1 %v307_v32, %s713_s30  ;;  %v363_v24 = vrot.slane %v920_v18, 1  ;;  %v445_v10 = vrot.slane %v930_v22, 2 }
  0xbe   :  { %v620_v37 = vcvt.s32.f32 %v619_v34  ;;  %vm618_vm3 = vcmp.lt.f32.partialorder %v617_v39, 8388608.0 }
  0xbf   :  { %v282_v40 = vpop.permute.xlu1 %281  ;;  %v253_v42 = vpop.permute.xlu0 %252 }
  0xc0   :  { %v621_v6 = vand.u32 2147483647, %v620_v37  ;;  %v291_v44 = vadd.f32 %v282_v40, %v260_v7  ;;  %v261_v45 = vadd.f32 %v253_v42, %v230_v36  ;;  %v459_v36 = vmul.f32 %v894_v19, %v814_v33 }
  0xc2   :  { %v623_v46 = vor.u32 %v622_v43, %v621_v6  ;;  %v296_v47 = vadd.f32 %v883_v51, %v291_v44  ;;  %v292_v48 = vadd.f32 %v284_v38, %v261_v45  ;;  %v467_v40 = vrot.slane %v459_v36, 2 }
  0xc3   :  { %v489_v44 = vmul.f32 %v894_v19, %v824_v41  ;;  %v407_v45 = vmul.f32 %v894_v19, %v795_v21 }
  0xc4   :  { %v903_v50 = vsel %vm618_vm3, %v623_v46, %v294_v31  ;;  %v635_v52 = vcvt.f32.s32 %v296_v47  ;;  %v297_v53 = vadd.f32 %v883_v51, %v292_v48  ;;  %v633_v55 = vand.u32 2147483647, %v296_v47 }
  0xc5   :  { %340 = vrot.lane.b32.xlu1 %v331_v49, %s714_s6  ;;  %v306_v54 = vmul.f32 %v903_v50, %v755_v2  ;;  %v638_v58 = vand.u32 2147483648, %v296_v47  ;;  %v354_v13 = vmul.f32 %v903_v50, %v857_v14  ;;  %v330_v17 = vmul.f32 %v903_v50, %v761_v5 }
  0xc6   :  { %v636_v1 = vcvt.s32.f32 %v635_v52  ;;  %v643_v56 = vcvt.f32.s32 %v297_v53  ;;  %v641_v60 = vand.u32 2147483647, %v297_v53  ;;  %vm634_vm4 = vcmp.lt.f32.partialorder %v633_v55, 8388608.0 }
  0xc7   :  { %314 = vrot.lane.b32.xlu0 %v306_v54, %s713_s30  ;;  %v646_v4 = vand.u32 2147483648, %v297_v53  ;;  %v362_v59 = vrot.slane %v354_v13, 1  ;;  %v436_v23 = vmul.f32 %v903_v50, %v865_v27  ;;  %v458_v46 = vmul.f32 %v903_v50, %v814_v33 }
  0xc8   :  { %v637_v57 = vand.u32 2147483647, %v636_v1  ;;  %v644_v62 = vcvt.s32.f32 %v643_v56  ;;  %vm642_vm5 = vcmp.lt.f32.partialorder %v641_v60, 8388608.0  ;;  %v415_v48 = vrot.slane %v407_v45, 1 }
  0xc9   :  { %v941_v26 = vsel %vm130_vm0, %v362_v59, %v363_v24  ;;  %v444_v9 = vrot.slane %v436_v23, 2  ;;  %v466_v49 = vrot.slane %v458_v46, 2  ;;  %v376_v52 = vmul.f32 %v903_v50, %v778_v12 }
  0xca   :  { %v639_v61 = vor.u32 %v638_v58, %v637_v57  ;;  %v645_v3 = vand.u32 2147483647, %v644_v62  ;;  %v488_v1 = vmul.f32 %v903_v50, %v824_v41 }
  0xcb   :  { %v384_v55 = vrot.slane %v376_v52, 1 }
  0xcc   :  { %v912_v11 = vsel %vm634_vm4, %v639_v61, %v296_v47  ;;  %v647_v15 = vor.u32 %v646_v4, %v645_v3  ;;  %v497_v47 = vrot.slane %v489_v44, 2  ;;  %v496_v57 = vrot.slane %v488_v1, 2 }
  0xcd   :  { %v308_v16 = vmul.f32 %v912_v11, %v755_v2  ;;  %v356_v25 = vmul.f32 %v912_v11, %v857_v14  ;;  %v332_v28 = vmul.f32 %v912_v11, %v761_v5  ;;  %v438_v34 = vmul.f32 %v912_v11, %v865_v27 }
  0xce   :  { %v922_v20 = vsel %vm642_vm5, %v647_v15, %v297_v53  ;;  %v378_v39 = vmul.f32 %v912_v11, %v778_v12  ;;  %v468_v53 = vsel %vm216_vm1, %v466_v49, %v467_v40  ;;  %v460_v61 = vmul.f32 %v912_v11, %v814_v33 }
  0xcf   :  { %318 = vrot.lane.b32.xlu2 %v308_v16, %s713_s30  ;;  %338 = vrot.lane.b32.xlu0 %v330_v17, %s714_s6  ;;  %v333_v63 = vmul.f32 %v922_v20, %v761_v5  ;;  %v945_v0 = vmul.f32 %v922_v20, %v857_v14  ;;  %v379_v29 = vmul.f32 %v922_v20, %v778_v12  ;;  %v365_v32 = vrot.slane %v356_v25, 1 }
  0xd0   :  { %v309_v30 = vmul.f32 %v922_v20, %v755_v2  ;;  %v960_v14 = vsel %vm216_vm1, %v444_v9, %v445_v10  ;;  %v964_v5 = vmul.f32 %v922_v20, %v865_v27  ;;  %v447_v37 = vrot.slane %v438_v34, 2 }
  0xd1   :  { %344 = vrot.lane.b32.xlu1 %v333_v63, %s714_s6  ;;  %v366_v31 = vrot.slane %v945_v0, 1  ;;  %v388_v35 = vrot.slane %v379_v29, 1  ;;  %v377_v27 = vmul.f32 %v894_v19, %v778_v12  ;;  %v387_v6 = vrot.slane %v378_v39, 1 }
  0xd2   :  { %v448_v7 = vrot.slane %v964_v5, 2  ;;  %v409_v54 = vmul.f32 %v922_v20, %v795_v21  ;;  %v406_v12 = vmul.f32 %v903_v50, %v795_v21  ;;  %v461_v62 = vmul.f32 %v922_v20, %v814_v33 }
  0xd3   :  { %v971_v2 = vsel %vm130_vm0, %v365_v32, %v366_v31  ;;  %v385_v42 = vrot.slane %v377_v27, 1  ;;  %v389_v43 = vsel %vm130_vm0, %v387_v6, %v388_v35  ;;  %v498_v60 = vsel %vm216_vm1, %v496_v57, %v497_v47 }
  0xd4   :  { %v982_v38 = vsel %vm216_vm1, %v447_v37, %v448_v7  ;;  %v418_v56 = vrot.slane %v409_v54, 1  ;;  %v491_v3 = vmul.f32 %v922_v20, %v824_v41  ;;  %v414_v4 = vrot.slane %v406_v12, 1 }
  0xd5   :  { %v386_v58 = vsel %vm130_vm0, %v384_v55, %v385_v42  ;;  %v470_v13 = vrot.slane %v461_v62, 2  ;;  %v490_v15 = vmul.f32 %v912_v11, %v824_v41  ;;  %v469_v16 = vrot.slane %v460_v61, 2 }
  0xd6   :  { %v500_v17 = vrot.slane %v491_v3, 2  ;;  %v416_v59 = vsel %vm130_vm0, %v414_v4, %v415_v48  ;;  %v408_v23 = vmul.f32 %v912_v11, %v795_v21  ;;  %v302_v21 = vmul.f32 %v903_v50, %v853_v8 }
  0xd7   :  { %320 = vrot.lane.b32.xlu2 %v309_v30, %s713_s30  ;;  %342 = vrot.lane.b32.xlu0 %v332_v28, %s714_s6  ;;  %v471_v63 = vsel %vm216_vm1, %v469_v16, %v470_v13  ;;  %v499_v33 = vrot.slane %v490_v15, 2  ;;  %v304_v6 = vmul.f32 %v912_v11, %v853_v8  ;;  %v303_v50 = vmul.f32 %v894_v19, %v853_v8 }
  0xd8   :  { %v417_v28 = vrot.slane %v408_v23, 1  ;;  %v305_v3 = vmul.f32 %v922_v20, %v853_v8 }
  0xd9   :  { %396 = vrot.lane.b32.xlu1 %v388_v35, %s713_s30  ;;  %v501_v25 = vsel %vm216_vm1, %v499_v33, %v500_v17 }
  0xda   :  { %v419_v41 = vsel %vm130_vm0, %v417_v28, %v418_v56 }
  0xdf   :  { %474 = vrot.lane.b32.xlu2 %v467_v40, %s713_s30  ;;  %392 = vrot.lane.b32.xlu0 %v385_v42, %s713_s30 }
  0xe1   :  { %394 = vrot.lane.b32.xlu1 %v389_v43, %s713_s30 }
  0xe7   :  { %504 = vrot.lane.b32.xlu2 %v497_v47, %s714_s6  ;;  %422 = vrot.lane.b32.xlu0 %v415_v48, %s714_s6 }
  0xe9   :  { %472 = vrot.lane.b32.xlu1 %v468_v53, %s713_s30 }
  0xef   :  { %390 = vrot.lane.b32.xlu2 %v386_v58, %s713_s30  ;;  %426 = vrot.lane.b32.xlu0 %v418_v56, %s714_s6 }
  0xf1   :  { %502 = vrot.lane.b32.xlu1 %v498_v60, %s714_s6 }
  0xf7   :  { %420 = vrot.lane.b32.xlu2 %v416_v59, %s714_s6  ;;  %476 = vrot.lane.b32.xlu0 %v471_v63, %s713_s30 }
  0xf9   :  { %506 = vrot.lane.b32.xlu1 %v501_v25, %s714_s6 }
  0xff   :  { %424 = vrot.lane.b32.xlu2 %v419_v41, %s714_s6  ;;  %478 = vrot.lane.b32.xlu0 %v470_v13, %s713_s30 }
 0x107   :  { %508 = vrot.lane.b32.xlu2 %v500_v17, %s714_s6 }
 0x129   :  { %v319_v29 = vpop.permute.xlu2 %318 }
 0x12a   :  { %v328_v43 = vadd.f32 %v319_v29, %v304_v6 }
 0x12f   :  { %v317_v30 = vpop.permute.xlu1 %316 }
 0x130   :  { %v327_v54 = vadd.f32 %v317_v30, %v303_v50 }
 0x131   :  { %v321_v9 = vpop.permute.xlu2 %320 }
 0x137   :  { %v341_v35 = vpop.permute.xlu1 %340 }
 0x138   :  { %v351_v55 = vadd.f32 %v341_v35, %v327_v54 }
 0x139   :  { %v475_v32 = vpop.permute.xlu2 %474  ;;  %v315_v34 = vpop.permute.xlu0 %314 }
 0x13a   :  { %v326_v37 = vadd.f32 %v315_v34, %v302_v21  ;;  %v373_v11 = vadd.f32 %v363_v24, %v351_v55 }
 0x141   :  { %v505_v36 = vpop.permute.xlu2 %504  ;;  %v339_v27 = vpop.permute.xlu0 %338 }
 0x142   :  { %v350_v39 = vadd.f32 %v339_v27, %v326_v37 }
 0x143   :  { %v345_v40 = vpop.permute.xlu1 %344 }
 0x144   :  { %v372_v42 = vadd.f32 %v941_v26, %v350_v39 }
 0x149   :  { %v391_v44 = vpop.permute.xlu2 %390  ;;  %v343_v45 = vpop.permute.xlu0 %342 }
 0x14a   :  { %v352_v46 = vadd.f32 %v343_v45, %v328_v43  ;;  %v402_v49 = vadd.f32 %v391_v44, %v372_v42 }
 0x14b   :  { %v397_v47 = vpop.permute.xlu1 %396 }
 0x14c   :  { %v374_v48 = vadd.f32 %v971_v2, %v352_v46 }
 0x151   :  { %v421_v52 = vpop.permute.xlu2 %420  ;;  %v393_v53 = vpop.permute.xlu0 %392 }
 0x152   :  { %v432_v1 = vadd.f32 %v421_v52, %v402_v49  ;;  %v403_v62 = vadd.f32 %v393_v53, %v373_v11 }
 0x153   :  { %v395_v26 = vpop.permute.xlu1 %394 }
 0x154   :  { %v454_v56 = vadd.f32 %v960_v14, %v432_v1  ;;  %v404_v57 = vadd.f32 %v395_v26, %v374_v48  ;;  %v329_v14 = vadd.f32 %v321_v9, %v305_v3 }
 0x156   :  { %v353_v15 = vadd.f32 %v345_v40, %v329_v14 }
 0x158   :  { %v375_v59 = vadd.f32 %v366_v31, %v353_v15 }
 0x159   :  { %v425_v58 = vpop.permute.xlu2 %424  ;;  %v423_v12 = vpop.permute.xlu0 %422 }
 0x15a   :  { %v434_v2 = vadd.f32 %v425_v58, %v404_v57  ;;  %v433_v61 = vadd.f32 %v423_v12, %v403_v62  ;;  %v405_v23 = vadd.f32 %v397_v47, %v375_v59 }
 0x15b   :  { %v473_v60 = vpop.permute.xlu1 %472 }
 0x15c   :  { %v456_v19 = vadd.f32 %v982_v38, %v434_v2  ;;  %v455_v4 = vadd.f32 %v445_v10, %v433_v61  ;;  %v484_v24 = vadd.f32 %v473_v60, %v454_v56 }
 0x15e   :  { %v485_v18 = vadd.f32 %v475_v32, %v455_v4 }
 0x160   :  { %v515_v63 = vadd.f32 %v505_v36, %v485_v18 }
 0x161   :  { %v427_v13 = vpop.permute.xlu0 %426  ;;  %v509_v29 = vpop.permute.xlu2 %508 }
 0x162   :  { %v519_v8 = vadd.f32 %v515_v63, %v883_v51  ;;  %v435_v20 = vadd.f32 %v427_v13, %v405_v23  ;;  %v584_v23 = vstv %s583_s18 }
 0x163   :  { %v503_v16 = vpop.permute.xlu1 %502 }
 0x164   :  { %v514_v17 = vadd.f32 %v503_v16, %v484_v24  ;;  %v457_v41 = vadd.f32 %v448_v7, %v435_v20 }
 0x166   :  { %v518_v38 = vadd.f32 %v514_v17, %v883_v51 }
 0x168   :  { %659 = vtanh.f32 %v518_v38 }
 0x169   :  { %v477_v33 = vpop.permute.xlu0 %476  ;;  %661 = vtanh.f32 %v519_v8  ;;  %v589_v8 = vstv %s587_s21 }
 0x16a   :  { %v486_v25 = vadd.f32 %v477_v33, %v456_v19 }
 0x16b   :  { %v507_v22 = vpop.permute.xlu1 %506 }
 0x16c   :  { %v516_v10 = vadd.f32 %v507_v22, %v486_v25 }
 0x16e   :  { %v520_v28 = vadd.f32 %v516_v10, %v883_v51  ;;  %v1056_v9 = vpop.eup %659 }
 0x16f   :  { %v1058_v32 = vpop.eup %661  ;;  %v545_v21 = vmul.f32 %v1056_v9, %v1056_v9  ;;  %v527_v5 = vsel %vm526_vm6, %v1056_v9, 0.0 }
 0x170   :  { %663 = vtanh.f32 %v520_v28  ;;  %v546_v7 = vmul.f32 %v1058_v32, %v1058_v32 }
 0x171   :  { %v479_v0 = vpop.permute.xlu0 %478  ;;  %v549_v27 = vsel %vm526_vm6, %v545_v21, 0.0 }
 0x172   :  { %v487_v31 = vadd.f32 %v479_v0, %v457_v41  ;;  %v550_v40 = vsel %vm528_vm7, %v546_v7, 0.0 }
 0x173   :  { %v551_v44 = vadd.f32 %v550_v40, %v549_v27 }
 0x174   :  { %v517_v30 = vadd.f32 %v509_v29, %v487_v31 }
 0x176   :  { %v521_v34 = vadd.f32 %v517_v30, %v883_v51  ;;  %v1061_v35 = vpop.eup %663  ;;  %v529_v51 = vsel %vm528_vm7, %v1058_v32, 0.0 }
 0x177   :  { %v547_v37 = vmul.f32 %v1061_v35, %v1061_v35  ;;  %v531_v36 = vsel %vm526_vm6, %v1061_v35, 0.0  ;;  %v530_v39 = vadd.f32 %v529_v51, %v527_v5 }
 0x178   :  { %665 = vtanh.f32 %v521_v34 }
 0x179   :  { %v552_v42 = vsel %vm526_vm6, %v547_v37, 0.0  ;;  %v532_v43 = vadd.f32 %v531_v36, %v530_v39 }
 0x17a   :  { %v553_v48 = vadd.f32 %v552_v42, %v551_v44 }
 0x17e   :  { %v666_v6 = vpop.eup %665 }
 0x17f   :  { %v533_v45 = vsel %vm528_vm7, %v666_v6, 0.0  ;;  %v548_v46 = vmul.f32 %v666_v6, %v666_v6 }
 0x180   :  { %v534_v47 = vadd.f32 %v533_v45, %v532_v43 }
 0x181   :  { %v554_v50 = vsel %vm528_vm7, %v548_v46, 0.0 }
 0x182   :  { %535 = vadd.xlane.f32.xlu0 %v534_v47  ;;  %v555_v49 = vadd.f32 %v554_v50, %v553_v48 }
 0x184   :  { %556 = vadd.xlane.f32.xlu1 %v555_v49 }
 0x1f5   :  { %v536_v52 = vpop.xlane.xlu0 %535 }
 0x1f6   :  { %v537_v53 = vrot.slane %v536_v52, 4 }
 0x1f7   :  { %v557_v54 = vpop.xlane.xlu1 %556 }
 0x1f8   :  { %v538_v1 = vadd.f32 %v537_v53, %v536_v52  ;;  %v558_v55 = vrot.slane %v557_v54, 4 }
 0x1fa   :  { %v539_v26 = vrot.slane %v538_v1, 2  ;;  %v559_v56 = vadd.f32 %v558_v55, %v557_v54 }
 0x1fc   :  { %v560_v11 = vrot.slane %v559_v56, 2  ;;  %v540_v57 = vadd.f32 %v539_v26, %v538_v1 }
 0x1fe   :  { %v561_v58 = vadd.f32 %v560_v11, %v559_v56  ;;  %v541_v12 = vrot.slane %v540_v57, 1 }
 0x200   :  { %v542_v62 = vadd.f32 %v541_v12, %v540_v57  ;;  %v562_v2 = vrot.slane %v561_v58, 1 }
 0x202   :  { %649 = vpush %v542_v62  ;;  %v563_v61 = vadd.f32 %v562_v2, %v561_v58 }
 0x204   :  { %651 = vpush %v563_v61 }
 0x233   :  { %s650_s2 = spop %649 }
 0x234   :  { %v544_v60 = vstv %s650_s2 }
 0x235   :  { %v566_v19 = vmul.f32 0.0034722222, %v544_v60  ;;  %s652_s15 = spop %651 }
 0x236   :  { %v565_v3 = vstv %s652_s15 }
 0x237   :  { %v568_v4 = vmul.f32 %v566_v19, %v566_v19  ;;  %v567_v13 = vmul.f32 0.0034722222, %v565_v3 }
 0x239   :  { %v569_v14 = vsub.f32 %v567_v13, %v568_v4 }
 0x23b   :  { %v570_v15 = vmax.f32 %v569_v14, 0.0 }
 0x23d   :  { %v571_v18 = vadd.f32 1e-05, %v570_v15 }
 0x23f   :  { %667 = vrsqrt.f32 %v571_v18  ;;  %vm578_vm9 = vweird.f32 %v571_v18 }
 0x245   :  { %v668_v24 = vpop.eup %667 }
 0x246   :  { %v573_v16 = vmul.f32 %v668_v24, %v571_v18  ;;  %vm579_vm8 = vweird.f32 %v668_v24 }
 0x247   :  { %vm580_vm10 = vmor %vm578_vm9, %vm579_vm8 }
 0x248   :  { %v574_v17 = vmul.f32 %v668_v24, %v573_v16 }
 0x24a   :  { %v575_v59 = vmul.f32 0.5, %v574_v17 }
 0x24c   :  { %v576_v63 = vsub.f32 1.5, %v575_v59 }
 0x24e   :  { %v577_v33 = vmul.f32 %v668_v24, %v576_v63 }
 0x250   :  { %v581_v38 = vsel %vm580_vm10, %v668_v24, %v577_v33 }
 0x251   :  { %v585_v25 = vmul.f32 %v584_v23, %v581_v38 }
 0x253   :  { %v588_v20 = vmul.f32 %v585_v25, %v566_v19  ;;  %v591_v10 = vmul.f32 %v1056_v9, %v585_v25  ;;  %v592_v28 = vmul.f32 %v1058_v32, %v585_v25  ;;  %v593_v41 = vmul.f32 %v1061_v35, %v585_v25 }
 0x254   :  { %v594_v0 = vmul.f32 %v666_v6, %v585_v25 }
 0x255   :  { %v590_v22 = vsub.f32 %v589_v8, %v588_v20 }
 0x257   :  { %v595_v31 = vadd.f32 %v591_v10, %v590_v22  ;;  %v596_v29 = vadd.f32 %v592_v28, %v590_v22  ;;  %v597_v30 = vadd.f32 %v593_v41, %v590_v22  ;;  %v598_v34 = vadd.f32 %v594_v0, %v590_v22 }
 0x259   :  { %599 = vst.msk [vmem:[%s1110_s5] sm:$0xff] %vm526_vm6, %v595_v31 }
 0x25a   :  { %600 = vst.msk [vmem:[%s1110_s5 + $0x8] sm:$0xf] %vm528_vm7, %v596_v29 }
 0x25b   :  { %601 = vst.msk [vmem:[%s1110_s5 + $0x10] sm:$0xff] %vm526_vm6, %v597_v30 }
 0x25c   :  { %602 = vst.msk [vmem:[%s1110_s5 + $0x18] sm:$0xf] %vm528_vm7, %v598_v34 }
 0x25d   :  { %607 = vsyncpa [#allocation6], 1 }
 0x25e   :  { %608 = vsyncpa [#allocation7], 1 }

</bundles_post_ra>
